<compile_context>
chip_gen: v7x
topology: tpu7x:2x2x1
jax: 0.10.0
libtpu: 0.0.40
codegen_flags: <defaults>
</compile_context>

<pallas_src>
import functools

import jax
import jax.numpy as jnp
from jax import lax
from jax.experimental import pallas as pl
from jax.experimental.pallas import tpu as pltpu


def _vmem_limit_bytes() -> int:
    """Generation-aware scoped-VMEM budget: half of physical, capped at 64 MiB."""
    cap = 64 * 1024 * 1024  # conservative fallback (v7x has 64 MiB per TC)
    try:
        cap = int(pltpu.get_tpu_info().vmem_capacity_bytes)
    except Exception:
        pass
    return max(16 * 1024 * 1024, min(cap // 2, 64 * 1024 * 1024))


def _pick_hw_tile(hw: int, c: int, itemsize: int, vmem_limit: int) -> int:
    """Lane tile: large multiple of 128 (~4-8 MiB of input bytes per block),
    or the full hw when one block covers the whole row."""
    target_bytes = min(8 * 1024 * 1024, vmem_limit // 6)
    target_elems = max(target_bytes // max(itemsize, 1), 128)
    t = max((target_elems // max(c, 1)) // 128 * 128, 128)
    if t >= hw:
        return hw  # single full-width tile (full-dim layout exception)
    return t


def _bn_stats_kernel(x_ref, psum_ref, psq_ref, *, hw, tile, needs_mask):
    """Per-N partial channel sum / sum-of-squares, accumulated over HW tiles.

    Output blocks (1, C, 1) stay resident across the HW ("arbitrary") axis and
    act as the accumulators; the N axis is "parallel" (megacore-friendly).
    """
    j = pl.program_id(1)

    @pl.when(j == 0)
    def _():
        psum_ref[...] = jnp.zeros_like(psum_ref)
        psq_ref[...] = jnp.zeros_like(psq_ref)

    x = x_ref[0].astype(jnp.float32)                        # (C, T)
    if needs_mask:
        lane = lax.broadcasted_iota(jnp.int32, x.shape, 1)
        x = jnp.where(lane < (hw - j * tile), x, 0.0)       # mask ragged tail
    psum_ref[0] += jnp.sum(x, axis=1, keepdims=True)        # (C, 1)
    psq_ref[0] += jnp.sum(x * x, axis=1, keepdims=True)     # (C, 1)


def _bn_apply_kernel(x_ref, scale_ref, shift_ref, o_ref):
    """y = x * scale + shift, per channel. Shared by train and eval paths."""
    x = x_ref[...].astype(jnp.float32)                      # (1, C, T)
    y = x * scale_ref[...] + shift_ref[...]                 # (C, 1) broadcasts
    o_ref[...] = y.astype(o_ref.dtype)


def _bn_fused_train_kernel(x_ref, w_ref, b_ref, y_ref, mean_ref, var_ref,
                           *, eps, inv_count):
    """Single-pass train path: whole (N, C, HW) resident in VMEM."""
    x = x_ref[...].astype(jnp.float32)                      # (N, C, HW)
    s = jnp.sum(x, axis=2, keepdims=True)                   # (N, C, 1)
    sq = jnp.sum(x * x, axis=2, keepdims=True)              # (N, C, 1)
    mean = jnp.sum(s, axis=0) * inv_count                   # (C, 1)
    var = jnp.maximum(jnp.sum(sq, axis=0) * inv_count - mean * mean, 0.0)
    inv_std = lax.rsqrt(var + eps)                          # EUP, ~free slot
    scale = w_ref[...] * inv_std                            # (C, 1)
    shift = b_ref[...] - mean * scale                       # (C, 1)
    y_ref[...] = (x * scale + shift).astype(y_ref.dtype)
    mean_ref[...] = mean
    var_ref[...] = var


def _apply_tiled(x3, scale, shift, T, vmem_limit):
    N, C, HW = x3.shape
    grid = (N, pl.cdiv(HW, T))
    return pl.pallas_call(
        _bn_apply_kernel,
        out_shape=jax.ShapeDtypeStruct((N, C, HW), x3.dtype),
        grid=grid,
        in_specs=[pl.BlockSpec((1, C, T), lambda n, j: (n, 0, j)),
                  pl.BlockSpec((C, 1), lambda n, j: (0, 0)),
                  pl.BlockSpec((C, 1), lambda n, j: (0, 0))],
        out_specs=pl.BlockSpec((1, C, T), lambda n, j: (n, 0, j)),
        compiler_params=pltpu.CompilerParams(
            dimension_semantics=("parallel", "parallel"),
            vmem_limit_bytes=vmem_limit),
    )(x3, scale, shift)


def batchnorm2d_forward(x, weight, bias, running_mean, running_var,
                        num_batches_tracked, *, eps=1e-5, momentum=0.1,
                        training=True, force_two_pass=False,
                        _tile_override=None):
    """Matches the reference BatchNorm2d.forward.

    x: (N, C, H, W); weight/bias/running_mean/running_var: (C,)
    Returns (y, new_running_mean, new_running_var, new_num_batches_tracked).
    """
    N, C, H, W = x.shape
    HW = H * W
    x3 = x.reshape(N, C, HW)               # free view, no transpose / HBM copy
    itemsize = jnp.dtype(x.dtype).itemsize
    vmem_limit = _vmem_limit_bytes()

    w32 = weight.astype(jnp.float32).reshape(C, 1)
    b32 = bias.astype(jnp.float32).reshape(C, 1)

    if training:
        xf32_bytes = N * C * HW * 4
        x_bytes = N * C * HW * itemsize
        fused_ok = ((3 * xf32_bytes + 2 * x_bytes) <= vmem_limit
                    and not force_two_pass)

        if fused_ok:
            # One kernel: 1 read + 1 write of x.
            y3, mean_c, var_c = pl.pallas_call(
                functools.partial(_bn_fused_train_kernel, eps=float(eps),
                                  inv_count=1.0 / float(N * HW)),
                out_shape=(jax.ShapeDtypeStruct((N, C, HW), x.dtype),
                           jax.ShapeDtypeStruct((C, 1), jnp.float32),
                           jax.ShapeDtypeStruct((C, 1), jnp.float32)),
                grid=(1,),
                in_specs=[pl.BlockSpec((N, C, HW), lambda i: (0, 0, 0)),
                          pl.BlockSpec((C, 1), lambda i: (0, 0)),
                          pl.BlockSpec((C, 1), lambda i: (0, 0))],
                out_specs=(pl.BlockSpec((N, C, HW), lambda i: (0, 0, 0)),
                           pl.BlockSpec((C, 1), lambda i: (0, 0)),
                           pl.BlockSpec((C, 1), lambda i: (0, 0))),
                compiler_params=pltpu.CompilerParams(
                    dimension_semantics=("arbitrary",),
                    vmem_limit_bytes=vmem_limit),
            )(x3, w32, b32)
            batch_mean = mean_c.reshape(C)
            batch_var = var_c.reshape(C)
        else:
            # Pass 1: per-N partial sums / sumsq (both cores drive DMA on v7x).
            T = _tile_override or _pick_hw_tile(HW, C, itemsize, vmem_limit)
            num_tiles = pl.cdiv(HW, T)
            needs_mask = (HW % T) != 0
            psum, psq = pl.pallas_call(
                functools.partial(_bn_stats_kernel, hw=HW, tile=T,
                                  needs_mask=needs_mask),
                out_shape=(jax.ShapeDtypeStruct((N, C, 1), jnp.float32),
                           jax.ShapeDtypeStruct((N, C, 1), jnp.float32)),
                grid=(N, num_tiles),
                in_specs=[pl.BlockSpec((1, C, T), lambda n, j: (n, 0, j))],
                out_specs=(pl.BlockSpec((1, C, 1), lambda n, j: (n, 0, 0)),
                           pl.BlockSpec((1, C, 1), lambda n, j: (n, 0, 0))),
                compiler_params=pltpu.CompilerParams(
                    dimension_semantics=("parallel", "arbitrary"),
                    vmem_limit_bytes=vmem_limit),
            )(x3)
            inv_count = 1.0 / float(N * HW)
            batch_mean = jnp.sum(psum, axis=0).reshape(C) * inv_count
            batch_var = jnp.maximum(
                jnp.sum(psq, axis=0).reshape(C) * inv_count
                - batch_mean * batch_mean, 0.0)

            # Tiny (C,)-sized prep then Pass 2: y = x*scale + shift.
            inv_std = lax.rsqrt(batch_var + eps)
            scale = (weight.astype(jnp.float32) * inv_std).reshape(C, 1)
            shift = (bias.astype(jnp.float32)
                     - batch_mean * weight.astype(jnp.float32) * inv_std
                     ).reshape(C, 1)
            y3 = _apply_tiled(x3, scale, shift, T, vmem_limit)

        y = y3.reshape(N, C, H, W)
        # Reference module feeds the BIASED variance into the running_var EMA.
        new_running_mean = momentum * batch_mean + (1.0 - momentum) * running_mean
        new_running_var = momentum * batch_var + (1.0 - momentum) * running_var
        new_nbt = num_batches_tracked + 1
        return y, new_running_mean, new_running_var, new_nbt

    # Eval: running stats -> fused scale/shift, single tiled apply pass.
    inv_std = lax.rsqrt(running_var.astype(jnp.float32) + eps)
    wv = weight.astype(jnp.float32)
    scale = (wv * inv_std).reshape(C, 1)
    shift = (bias.astype(jnp.float32)
             - running_mean.astype(jnp.float32) * wv * inv_std).reshape(C, 1)
    T = _tile_override or _pick_hw_tile(HW, C, itemsize, vmem_limit)
    y3 = _apply_tiled(x3, scale, shift, T, vmem_limit)
    y = y3.reshape(N, C, H, W)
    return y, running_mean, running_var, num_batches_tracked


if __name__ == "__main__":
    key = jax.random.PRNGKey(0)
    N, C, H, W = 2, 4, 16, 16
    x = jax.random.normal(key, (N, C, H, W), dtype=jnp.float32)

    # Deterministic init matching BatchNorm2d.__init__.
    weight = jnp.ones((C,), jnp.float32)
    bias = jnp.zeros((C,), jnp.float32)
    running_mean = jnp.zeros((C,), jnp.float32)
    running_var = jnp.ones((C,), jnp.float32)
    nbt = jnp.array(0, jnp.int32)

    mean_ref = jnp.mean(x, axis=(0, 2, 3))
    var_ref = jnp.mean((x - mean_ref.reshape(1, C, 1, 1)) ** 2, axis=(0, 2, 3))
    y_ref = ((x - mean_ref.reshape(1, C, 1, 1))
             / jnp.sqrt(var_ref.reshape(1, C, 1, 1) + 1e-5)
             * weight.reshape(1, C, 1, 1) + bias.reshape(1, C, 1, 1))

    # Training mode -- fused single-kernel fast path.
    y, rm, rv, nbt1 = batchnorm2d_forward(
        x, weight, bias, running_mean, running_var, nbt,
        eps=1e-5, momentum=0.1, training=True)
    jax.block_until_ready((y, rm, rv, nbt1))
    assert jnp.allclose(y, y_ref, atol=1e-4, rtol=1e-4), "fused train mismatch"
    assert jnp.allclose(rm, 0.1 * mean_ref + 0.9 * running_mean, atol=1e-5)
    assert jnp.allclose(rv, 0.1 * var_ref + 0.9 * running_var, atol=1e-5)
    assert int(nbt1) == 1

    # Training mode -- two-pass (stats + apply) path, same answer.
    y2, rm2, rv2, nbt2 = batchnorm2d_forward(
        x, weight, bias, running_mean, running_var, nbt,
        eps=1e-5, momentum=0.1, training=True, force_two_pass=True)
    jax.block_until_ready((y2, rm2, rv2))
    assert jnp.allclose(y2, y_ref, atol=1e-4, rtol=1e-4), "two-pass mismatch"
    assert jnp.allclose(rm2, rm, atol=1e-5) and jnp.allclose(rv2, rv, atol=1e-5)

    # Training mode -- ragged HW with a forced small tile exercises tail masking.
    Hr = Wr = 15
    xr = jax.random.normal(jax.random.PRNGKey(1), (N, C, Hr, Wr), jnp.float32)
    mr = jnp.mean(xr, axis=(0, 2, 3))
    vr = jnp.mean((xr - mr.reshape(1, C, 1, 1)) ** 2, axis=(0, 2, 3))
    yr_ref = ((xr - mr.reshape(1, C, 1, 1)) / jnp.sqrt(vr.reshape(1, C, 1, 1) + 1e-5)
              * weight.reshape(1, C, 1, 1) + bias.reshape(1, C, 1, 1))
    yr, rmr, rvr, _ = batchnorm2d_forward(
        xr, weight, bias, running_mean, running_var, nbt,
        eps=1e-5, momentum=0.1, training=True,
        force_two_pass=True, _tile_override=128)
    jax.block_until_ready((yr, rmr, rvr))
    assert jnp.allclose(yr, yr_ref, atol=1e-4, rtol=1e-4), "ragged-tail mismatch"
    assert jnp.allclose(rmr, 0.1 * mr + 0.9 * running_mean, atol=1e-5)
    assert jnp.allclose(rvr, 0.1 * vr + 0.9 * running_var, atol=1e-5)

    # Eval mode reuses the tiled apply kernel with running stats.
    y_eval, _, _, _ = batchnorm2d_forward(
        x, weight, bias, rm, rv, nbt1, eps=1e-5, momentum=0.1, training=False)
    jax.block_until_ready(y_eval)
    y_eval_ref = ((x - rm.reshape(1, C, 1, 1))
                  / jnp.sqrt(rv.reshape(1, C, 1, 1) + 1e-5)
                  * weight.reshape(1, C, 1, 1) + bias.reshape(1, C, 1, 1))
    assert jnp.allclose(y_eval, y_eval_ref, atol=1e-4, rtol=1e-4), "eval mismatch"

    print("KERNEL_OK")
</pallas_src>

<mosaic_0001>
module attributes {stable_mosaic.version = 11 : i64} {
  func.func @_bn_fused_train_kernel(%arg0: i32, %arg1: memref<2x4x256xf32, #tpu.memory_space<vmem>>, %arg2: memref<4x1xf32, #tpu.memory_space<vmem>>, %arg3: memref<4x1xf32, #tpu.memory_space<vmem>>, %arg4: memref<2x4x256xf32, #tpu.memory_space<vmem>>, %arg5: memref<4x1xf32, #tpu.memory_space<vmem>>, %arg6: memref<4x1xf32, #tpu.memory_space<vmem>>) attributes {dimension_semantics = [#tpu.dimension_semantics<arbitrary>], iteration_bounds = array<i64: 1>, scalar_prefetch = 0 : i64, scratch_operands = 0 : i64, tpu.core_type = #tpu.core_type<tc>, window_params = [{pipeline_mode = #tpu.pipeline_mode<synchronous>, transform_indices = @transform_0, window_bounds = array<i64: 2, 4, 256>}, {pipeline_mode = #tpu.pipeline_mode<synchronous>, transform_indices = @transform_1, window_bounds = array<i64: 4, 1>}, {pipeline_mode = #tpu.pipeline_mode<synchronous>, transform_indices = @transform_2, window_bounds = array<i64: 4, 1>}, {pipeline_mode = #tpu.pipeline_mode<synchronous>, transform_indices = @transform_3, window_bounds = array<i64: 2, 4, 256>}, {pipeline_mode = #tpu.pipeline_mode<synchronous>, transform_indices = @transform_4, window_bounds = array<i64: 4, 1>}, {pipeline_mode = #tpu.pipeline_mode<synchronous>, transform_indices = @transform_5, window_bounds = array<i64: 4, 1>}]} {
    %c0 = arith.constant 0 : index
    %c0_0 = arith.constant 0 : index
    %c0_1 = arith.constant 0 : index
    %0 = vector.load %arg1[%c0, %c0_0, %c0_1] : memref<2x4x256xf32, #tpu.memory_space<vmem>>, vector<2x4x256xf32>
    %cst = arith.constant dense<0.000000e+00> : vector<2x4xf32>
    %1 = vector.multi_reduction <add>, %0, %cst [2] : vector<2x4x256xf32> to vector<2x4xf32>
    %2 = vector.shape_cast %1 : vector<2x4xf32> to vector<2x4x1xf32>
    %3 = arith.mulf %0, %0 : vector<2x4x256xf32>
    %cst_2 = arith.constant dense<0.000000e+00> : vector<2x4xf32>
    %4 = vector.multi_reduction <add>, %3, %cst_2 [2] : vector<2x4x256xf32> to vector<2x4xf32>
    %5 = vector.shape_cast %4 : vector<2x4xf32> to vector<2x4x1xf32>
    %cst_3 = arith.constant dense<0.000000e+00> : vector<4x1xf32>
    %6 = vector.multi_reduction <add>, %2, %cst_3 [0] : vector<2x4x1xf32> to vector<4x1xf32>
    %cst_4 = arith.constant 0.001953125 : f32
    %7 = vector.broadcast %cst_4 : f32 to vector<4x1xf32>
    %8 = arith.mulf %6, %7 : vector<4x1xf32>
    %cst_5 = arith.constant dense<0.000000e+00> : vector<4x1xf32>
    %9 = vector.multi_reduction <add>, %5, %cst_5 [0] : vector<2x4x1xf32> to vector<4x1xf32>
    %cst_6 = arith.constant 0.001953125 : f32
    %10 = vector.broadcast %cst_6 : f32 to vector<4x1xf32>
    %11 = arith.mulf %9, %10 : vector<4x1xf32>
    %12 = arith.mulf %8, %8 : vector<4x1xf32>
    %13 = arith.subf %11, %12 : vector<4x1xf32>
    %cst_7 = arith.constant 0.000000e+00 : f32
    %14 = vector.broadcast %cst_7 : f32 to vector<4x1xf32>
    %15 = arith.maximumf %13, %14 : vector<4x1xf32>
    %cst_8 = arith.constant 9.99999974E-6 : f32
    %16 = vector.broadcast %cst_8 : f32 to vector<4x1xf32>
    %17 = arith.addf %15, %16 : vector<4x1xf32>
    %18 = math.rsqrt %17 : vector<4x1xf32>
    %c0_9 = arith.constant 0 : index
    %c0_10 = arith.constant 0 : index
    %19 = vector.load %arg2[%c0_9, %c0_10] : memref<4x1xf32, #tpu.memory_space<vmem>>, vector<4x1xf32>
    %20 = arith.mulf %19, %18 : vector<4x1xf32>
    %c0_11 = arith.constant 0 : index
    %c0_12 = arith.constant 0 : index
    %21 = vector.load %arg3[%c0_11, %c0_12] : memref<4x1xf32, #tpu.memory_space<vmem>>, vector<4x1xf32>
    %22 = arith.mulf %8, %20 : vector<4x1xf32>
    %23 = arith.subf %21, %22 : vector<4x1xf32>
    %24 = vector.shape_cast %20 : vector<4x1xf32> to vector<1x4x1xf32>
    %25 = vector.broadcast %24 : vector<1x4x1xf32> to vector<2x4x256xf32>
    %26 = arith.mulf %0, %25 : vector<2x4x256xf32>
    %27 = vector.shape_cast %23 : vector<4x1xf32> to vector<1x4x1xf32>
    %28 = vector.broadcast %27 : vector<1x4x1xf32> to vector<2x4x256xf32>
    %29 = arith.addf %26, %28 : vector<2x4x256xf32>
    %c0_13 = arith.constant 0 : index
    %c0_14 = arith.constant 0 : index
    %c0_15 = arith.constant 0 : index
    %30 = vector.load %arg4[%c0_13, %c0_14, %c0_15] : memref<2x4x256xf32, #tpu.memory_space<vmem>>, vector<2x4x256xf32>
    tpu.vector_store %arg4[%c0_13, %c0_14, %c0_15], %29 {strides = array<i32>} : memref<2x4x256xf32, #tpu.memory_space<vmem>>, vector<2x4x256xf32>,
    %c0_16 = arith.constant 0 : index
    %c0_17 = arith.constant 0 : index
    %31 = vector.load %arg5[%c0_16, %c0_17] : memref<4x1xf32, #tpu.memory_space<vmem>>, vector<4x1xf32>
    tpu.vector_store %arg5[%c0_16, %c0_17], %8 {strides = array<i32>} : memref<4x1xf32, #tpu.memory_space<vmem>>, vector<4x1xf32>,
    %c0_18 = arith.constant 0 : index
    %c0_19 = arith.constant 0 : index
    %32 = vector.load %arg6[%c0_18, %c0_19] : memref<4x1xf32, #tpu.memory_space<vmem>>, vector<4x1xf32>
    tpu.vector_store %arg6[%c0_18, %c0_19], %15 {strides = array<i32>} : memref<4x1xf32, #tpu.memory_space<vmem>>, vector<4x1xf32>,
    return
  }
  func.func @transform_0(%arg0: i32) -> (i32, i32, i32) {
    %c0_i32 = arith.constant 0 : i32
    %c0_i32_0 = arith.constant 0 : i32
    %c0_i32_1 = arith.constant 0 : i32
    %c0_i32_2 = arith.constant 0 : i32
    return %c0_i32, %c0_i32_0, %c0_i32_1 : i32, i32, i32
  }
  func.func @transform_1(%arg0: i32) -> (i32, i32) {
    %c0_i32 = arith.constant 0 : i32
    %c0_i32_0 = arith.constant 0 : i32
    %c0_i32_1 = arith.constant 0 : i32
    return %c0_i32, %c0_i32_0 : i32, i32
  }
  func.func @transform_2(%arg0: i32) -> (i32, i32) {
    %c0_i32 = arith.constant 0 : i32
    %c0_i32_0 = arith.constant 0 : i32
    %c0_i32_1 = arith.constant 0 : i32
    return %c0_i32, %c0_i32_0 : i32, i32
  }
  func.func @transform_3(%arg0: i32) -> (i32, i32, i32) {
    %c0_i32 = arith.constant 0 : i32
    %c0_i32_0 = arith.constant 0 : i32
    %c0_i32_1 = arith.constant 0 : i32
    %c0_i32_2 = arith.constant 0 : i32
    return %c0_i32, %c0_i32_0, %c0_i32_1 : i32, i32, i32
  }
  func.func @transform_4(%arg0: i32) -> (i32, i32) {
    %c0_i32 = arith.constant 0 : i32
    %c0_i32_0 = arith.constant 0 : i32
    %c0_i32_1 = arith.constant 0 : i32
    return %c0_i32, %c0_i32_0 : i32, i32
  }
  func.func @transform_5(%arg0: i32) -> (i32, i32) {
    %c0_i32 = arith.constant 0 : i32
    %c0_i32_0 = arith.constant 0 : i32
    %c0_i32_1 = arith.constant 0 : i32
    return %c0_i32, %c0_i32_0 : i32, i32
  }
}

</mosaic_0001>

<bundles_post_ra>
// kernel: tpu_custom_call.1
= control target key start
LH: loop header
LB: loop body
LE: loop exit
PB: predicated region body
PF: predicated region fallthrough
CT: control target
= control target key end

     0   :  { %11 = vsyncpa [#allocation3], 0  ;;  %s311_s0 = inlined_call_operand.hbm [shape: f32[2,4,256], index: 0, kind: input, shape index: {}]   ;;  %s312_s1 = inlined_call_operand.vmem [shape: f32[4,1], index: 1, kind: input, shape index: {}]   ;;  %s313_s2 = inlined_call_operand.vmem [shape: f32[4,1], index: 2, kind: input, shape index: {}]   ;;  %s314_s3 = inlined_call_operand.hbm [shape: f32[2,4,256], index: 3, kind: output, shape index: {0}]   ;;  %s315_s4 = inlined_call_operand.vmem [shape: f32[4,1], index: 4, kind: output, shape index: {1}]   ;;  %s316_s5 = inlined_call_operand.vmem [shape: f32[4,1], index: 5, kind: output, shape index: {2}]  }
   0x1   :  { %12 = vsyncpa [#allocation4], 0  ;;  %s205_s18 = smov [#allocation2]   ;;  %s157_s22 = scalar_lea.hbm %s311_s0, 256 }
   0x2   :  { %s18_s19 = sshll.u32 %s205_s18, 4  ;;  %p158_p0 = scmp.ne.s32.totalorder %s311_s0, %s157_s22  ;;  %s19_s19 = int_to_ptr.vmem [resolvable:$true] %s18_s19 }
   0x3   :  { %p161_p1 = scmp.lt.u32.totalorder %s157_s22, %s311_s0 }
   0x5   :  { %p163_p2 = pnand %p161_p1, %p158_p0 }
   0x7   :  { %166 = shalt.err (!%p163_p2)
}
   0x8   :  { %s167_s27 = scalar_lea.vmem %s19_s19, 256  ;;  %p172_p4 = scmp.lt.s32.totalorder %s19_s19, %s19_s19 }
   0x9   :  { %p168_p3 = scmp.ne.s32.totalorder %s19_s19, %s167_s27  ;;  %p173_p5 = scmp.lt.s32.totalorder %s167_s27, %s167_s27 }
   0xb   :  { %p174_p6 = por %p173_p5, %p172_p4 }
   0xd   :  { %p175_p7 = pnand %p174_p6, %p168_p3 }
   0xf   :  { %178 = shalt.err (!%p175_p7)
}
  0x10   :  { %s206_s28 = smov 128   ;;  %s207_s29 = smov 8  }
  0x11   :  { %24 = dma.hbm_to_vmem [thread:$0]  %s311_s0, 256, %s19_s19, [#allocation3], %s206_s28, %s206_s28, %s207_s29  }
  0x12   :  { %201 = dma.done.wait [#allocation3], 256  }
  0x13   :  { %202 = vsyncadd [#allocation3], 4294967040  ;;  %vm40_vm0 = vcmask 1043456   ;;  %v256_v0 = vld [vmem:[#allocation2] sm:$0xff]  ;;  %v258_v1 = vld [vmem:[#allocation2 + $0x8] sm:$0xff]  ;;  %v208_v20 = vmov 0   ;;  %v94_v45 = vlaneseq }
  0x14   :  { %v36_v2 = vcombine.high %v256_v0, %v256_v0  ;;  %v41_v3 = vsel %vm40_vm0, %v256_v0, 0.0  ;;  %v51_v4 = vmul.f32 %v256_v0, %v256_v0  ;;  %v37_v5 = vcombine.high %v258_v1, %v258_v1  ;;  %151 = vset.pattern.permute.xlu0 %v208_v20  ;;  %152 = vset.pattern.permute.xlu1 %v208_v20  ;;  %v82_v37 = vld [vmem:[%s312_s1] sm:$0xf]  ;;  %s210_s1 = smov [#allocation5]  }
  0x15   :  { %v46_v6 = vsel %vm40_vm0, %v258_v1, 0.0  ;;  %v52_v7 = vmul.f32 %v258_v1, %v258_v1  ;;  %vm117_vm1 = vcmask 3072   ;;  %v84_v40 = vld [vmem:[%s313_s2] sm:$0xf]  ;;  %v209_v43 = vmov 839922192  }
  0x16   :  { %v42_v8 = vsel %vm40_vm0, %v36_v2, 0.0  ;;  %v55_v9 = vcombine.high %v51_v4, %v51_v4  ;;  %v59_v10 = vsel %vm40_vm0, %v51_v4, 0.0  ;;  %v47_v11 = vsel %vm40_vm0, %v37_v5, 0.0 }
  0x17   :  { %v43_v12 = vadd.f32 %v42_v8, %v41_v3  ;;  %v56_v13 = vcombine.high %v52_v7, %v52_v7  ;;  %v64_v15 = vsel %vm40_vm0, %v52_v7, 0.0  ;;  %v48_v17 = vadd.f32 %v47_v11, %v46_v6 }
  0x18   :  { %v60_v14 = vsel %vm40_vm0, %v55_v9, 0.0  ;;  %v92_v44 = vunpack.c.l.s4 %v209_v43  ;;  %v95_v47 = vshrl.u32 %v94_v45, 7 }
  0x19   :  { %44 = vadd.xlane.f32.xlu0 %v43_v12  ;;  %v61_v16 = vadd.f32 %v60_v14, %v59_v10  ;;  %v65_v18 = vsel %vm40_vm0, %v56_v13, 0.0 }
  0x1a   :  { %v66_v19 = vadd.f32 %v65_v18, %v64_v15  ;;  %v93_v46 = vunpack.c.0.s8 %v92_v44 }
  0x1b   :  { %62 = vadd.xlane.f32.xlu1 %v61_v16 }
  0x1c   :  { %v96_v48 = vsub.s32 %v93_v46, %v95_v47 }
  0x1d   :  { %49 = vadd.xlane.f32.xlu0 %v48_v17 }
  0x1f   :  { %67 = vadd.xlane.f32.xlu1 %v66_v19 }
  0xa6   :  { %v45_v21 = vpop.xlane.xlu0 %44 }
  0xa7   :  { %v69_v24 = vsel %vm40_vm0, %v45_v21, 0.0 }
  0xa8   :  { %v63_v22 = vpop.xlane.xlu1 %62 }
  0xa9   :  { %v73_v28 = vsel %vm40_vm0, %v63_v22, 0.0 }
  0xaa   :  { %v50_v23 = vpop.xlane.xlu0 %49 }
  0xab   :  { %v70_v25 = vsel %vm40_vm0, %v50_v23, 0.0 }
  0xac   :  { %v71_v26 = vadd.f32 %v70_v25, %v69_v24  ;;  %v68_v27 = vpop.xlane.xlu1 %67 }
  0xad   :  { %v74_v29 = vsel %vm40_vm0, %v68_v27, 0.0 }
  0xae   :  { %v72_v30 = vmul.f32 0.001953125, %v71_v26  ;;  %v75_v31 = vadd.f32 %v74_v29, %v73_v28 }
  0xb0   :  { %118 = vst.msk [vmem:[%s315_s4] sm:$0xf] %vm117_vm1, %v72_v30  ;;  %v76_v32 = vmul.f32 0.001953125, %v75_v31  ;;  %v77_v33 = vmul.f32 %v72_v30, %v72_v30  ;;  %s125_s4 = sshll.u32 %s210_s1, 4  ;;  %s126_s4 = int_to_ptr.vmem [resolvable:$true] %s125_s4 }
  0xb1   :  { %s179_s2 = scalar_lea.vmem %s126_s4, 256  ;;  %p184_p9 = scmp.lt.s32.totalorder %s126_s4, %s126_s4 }
  0xb2   :  { %v78_v34 = vsub.f32 %v76_v32, %v77_v33  ;;  %p180_p8 = scmp.ne.s32.totalorder %s126_s4, %s179_s2  ;;  %p185_p10 = scmp.lt.s32.totalorder %s179_s2, %s179_s2 }
  0xb4   :  { %v79_v35 = vmax.f32 %v78_v34, 0.0  ;;  %p186_p11 = por %p185_p10, %p184_p9 }
  0xb6   :  { %v80_v36 = vadd.f32 1e-05, %v79_v35  ;;  %119 = vst.msk [vmem:[%s316_s5] sm:$0xf] %vm117_vm1, %v79_v35  ;;  %p187_p12 = pnand %p186_p11, %p180_p8 }
  0xb8   :  { %155 = vrsqrt.f32 %v80_v36 }
  0xc2   :  { %v156_v38 = vpop.eup %155 }
  0xc3   :  { %v83_v39 = vmul.f32 %v156_v38, %v82_v37 }
  0xc5   :  { %89 = vperm.xlu0 %151, %v83_v39   ;;  %v85_v41 = vmul.f32 %v83_v39, %v72_v30 }
  0xc7   :  { %v86_v42 = vsub.f32 %v84_v40, %v85_v41 }
  0xc9   :  { %103 = vperm.xlu1 %152, %v86_v42  }
 0x144   :  { %v90_v49 = vpop.permute.xlu0 %89 }
 0x145   :  { %v97_v50 = vrot.slane %v90_v49, %v96_v48 }
 0x147   :  { %v99_v52 = vmul.f32 %v97_v50, %v256_v0  ;;  %v100_v53 = vmul.f32 %v97_v50, %v258_v1 }
 0x148   :  { %v104_v51 = vpop.permute.xlu1 %103 }
 0x149   :  { %v111_v54 = vrot.slane %v104_v51, %v96_v48 }
 0x14b   :  { %v113_v55 = vadd.f32 %v111_v54, %v99_v52  ;;  %v114_v56 = vadd.f32 %v111_v54, %v100_v53 }
 0x14d   :  { %115 = vst [vmem:[#allocation5] sm:$0xff] %v113_v55  ;;  %116 = vst [vmem:[#allocation5 + $0x8] sm:$0xff] %v114_v56 }
 0x14e   :  { %190 = shalt.err (!%p187_p12)
}
 0x14f   :  { %s191_s15 = scalar_lea.hbm %s314_s3, 256 }
 0x150   :  { %p192_p13 = scmp.ne.s32.totalorder %s314_s3, %s191_s15  ;;  %p195_p0 = scmp.lt.u32.totalorder %s191_s15, %s314_s3 }
 0x152   :  { %p197_p1 = pnand %p195_p0, %p192_p13 }
 0x154   :  { %200 = shalt.err (!%p197_p1)
}
 0x155   :  { %131 = dma.vmem_to_hbm [thread:$0]  %s126_s4, 256, %s314_s3, [#allocation4], %s206_s28, %s206_s28, %s207_s29  }
 0x156   :  { %203 = dma.done.wait [#allocation4], 256  }
 0x157   :  { %204 = vsyncadd [#allocation4], 4294967040 }
 0x158   :  { %143 = vsyncpa [#allocation3], 1 }
 0x159   :  { %144 = vsyncpa [#allocation4], 1 }

</bundles_post_ra>
